<compile_context>
chip_gen: v5e
topology: v5e:2x2
jax: 0.10.0
libtpu: 0.0.40
codegen_flags: <defaults>
</compile_context>

<pallas_src>
import functools

import jax
import jax.numpy as jnp
from jax.experimental import pallas as pl
from jax.experimental.pallas import tpu as pltpu

EPS = 0.05


def controller_kernel(h_ref, w_ref, b_ref, u_ref, out_ref):
    """One batch block.

    h_ref:  (bB, In)   f32   hidden state block
    w_ref:  (In, Out)  f32   linear weight (pre-transposed, resident)
    b_ref:  (1, Out)   f32   linear bias (resident)
    u_ref:  (bB, Out)  f32   uniforms in [0, 1) for the Bernoulli sample
    out_ref:(bB, 4*Out)f32   packed [halt | log_pi | -log(p) | p] along lanes
    """
    # Linear layer on the MXU (f32 operands, f32 accumulation).
    logits = jnp.dot(h_ref[...], w_ref[...],
                     preferred_element_type=jnp.float32) + b_ref[...]

    # Sigmoid (EUP) + epsilon-mix toward 1.0 (the isCuda branch of the module).
    p = (1.0 - EPS) * jax.nn.sigmoid(logits) + EPS

    # Bernoulli sample via the pre-drawn uniforms: halt = 1{u < p}.
    pred = u_ref[...] < p
    halt = pred.astype(jnp.float32)

    # Bernoulli log-prob of the sampled action (clamp 1-p away from 0).
    log_p = jnp.log(p)                                   # p >= eps, always safe
    log_1mp = jnp.log(jnp.maximum(1.0 - p, 1e-12))
    log_pi = jnp.where(pred, log_p, log_1mp)

    # One lane-dense packed store instead of four narrow masked stores.
    out_ref[...] = jnp.concatenate([halt, log_pi, -log_p, p], axis=-1)


@functools.partial(jax.jit, static_argnames=("block_b",))
def controller_forward(h_t, w_t, b, key, *, block_b=None):
    """h_t: (B, In) f32  (B may be T*E stacked timesteps/envs)
       w_t: (In, Out) f32  (nn.Linear weight, pre-transposed to (In, Out))
       b:   (1, Out) f32
       key: jax PRNG key for the Bernoulli sample
    returns (halt, log_pi, -log(probs), probs), each (B, Out) f32."""
    B, In = h_t.shape
    Out = w_t.shape[1]

    if block_b is None:
        block_b = B if B <= 256 else 256
    assert B % block_b == 0
    assert block_b == B or block_b % 8 == 0  # (8,128) sublane constraint

    # Bernoulli uniforms drawn host/XLA-side (portable; no TPU-only PRNG ops).
    u = jax.random.uniform(key, (B, Out), dtype=jnp.float32)

    grid = (B // block_b,)
    packed = pl.pallas_call(
        controller_kernel,
        out_shape=jax.ShapeDtypeStruct((B, 4 * Out), jnp.float32),
        grid=grid,
        in_specs=[
            pl.BlockSpec((block_b, In), lambda i: (i, 0)),   # h block
            pl.BlockSpec((In, Out), lambda i: (0, 0)),       # weight (resident)
            pl.BlockSpec((1, Out), lambda i: (0, 0)),        # bias   (resident)
            pl.BlockSpec((block_b, Out), lambda i: (i, 0)),  # uniforms
        ],
        out_specs=pl.BlockSpec((block_b, 4 * Out), lambda i: (i, 0)),
        compiler_params=pltpu.CompilerParams(
            dimension_semantics=("parallel",)),  # megacore-shardable on v7x
    )(h_t, w_t, b, u)

    halt = packed[:, 0 * Out:1 * Out]
    log_pi = packed[:, 1 * Out:2 * Out]
    neg_log_p = packed[:, 2 * Out:3 * Out]
    probs = packed[:, 3 * Out:4 * Out]
    return halt, log_pi, neg_log_p, probs


if __name__ == "__main__":
    # Stacked batch: e.g. 8 timesteps x 8 environments of the ACT/RL loop.
    # Out = 32 makes the packed output exactly 128 lanes (fully lane-dense).
    B, IN, OUT = 64, 32, 32
    BLOCK_B = 32  # grid=(2,), each block a multiple of 8 sublanes

    key = jax.random.PRNGKey(0)
    k_h, k_w, k_b, k_u = jax.random.split(key, 4)

    # Deterministic synthetic parameters (nn.Linear(input_size, output_size)).
    h_t = jax.random.normal(k_h, (B, IN), dtype=jnp.float32)
    w = jax.random.normal(k_w, (OUT, IN), dtype=jnp.float32) * 0.1  # torch layout
    w_t = w.T                                                       # kernel layout (In, Out)
    b = (jax.random.normal(k_b, (OUT,), dtype=jnp.float32) * 0.1).reshape(1, OUT)

    halt, log_pi, neg_log_p, probs = controller_forward(
        h_t, w_t, b, k_u, block_b=BLOCK_B)
    jax.block_until_ready((halt, log_pi, neg_log_p, probs))

    # Pure-JAX reference for the deterministic parts.
    logits_ref = jnp.dot(h_t, w_t, preferred_element_type=jnp.float32) + b
    probs_ref = (1.0 - EPS) * jax.nn.sigmoid(logits_ref) + EPS

    assert jnp.allclose(probs, probs_ref, atol=1e-5, rtol=1e-5)
    assert jnp.allclose(neg_log_p, -jnp.log(probs), atol=1e-5, rtol=1e-5)
    # halt must be 0/1 and log_pi must equal the Bernoulli log-prob of halt.
    assert bool(jnp.all((halt == 0.0) | (halt == 1.0)))
    lp_ref = jnp.where(halt > 0.5, jnp.log(probs),
                       jnp.log(jnp.maximum(1.0 - probs, 1e-12)))
    assert jnp.allclose(log_pi, lp_ref, atol=1e-5, rtol=1e-5)

    print("KERNEL_OK")
</pallas_src>

<mosaic_0001>
module attributes {stable_mosaic.version = 11 : i64} {
  func.func @controller_kernel(%arg0: i32, %arg1: memref<32x32xf32, #tpu.memory_space<vmem>>, %arg2: memref<32x32xf32, #tpu.memory_space<vmem>>, %arg3: memref<1x32xf32, #tpu.memory_space<vmem>>, %arg4: memref<32x32xf32, #tpu.memory_space<vmem>>, %arg5: memref<32x128xf32, #tpu.memory_space<vmem>>) attributes {dimension_semantics = [#tpu.dimension_semantics<parallel>], iteration_bounds = array<i64: 2>, scalar_prefetch = 0 : i64, scratch_operands = 0 : i64, tpu.core_type = #tpu.core_type<tc>, window_params = [{transform_indices = @transform_0, window_bounds = array<i64: 32, 32>}, {pipeline_mode = #tpu.pipeline_mode<synchronous>, transform_indices = @transform_1, window_bounds = array<i64: 32, 32>}, {pipeline_mode = #tpu.pipeline_mode<synchronous>, transform_indices = @transform_2, window_bounds = array<i64: 1, 32>}, {transform_indices = @transform_3, window_bounds = array<i64: 32, 32>}, {transform_indices = @transform_4, window_bounds = array<i64: 32, 128>}]} {
    %c0 = arith.constant 0 : index
    %c0_0 = arith.constant 0 : index
    %0 = vector.load %arg1[%c0, %c0_0] : memref<32x32xf32, #tpu.memory_space<vmem>>, vector<32x32xf32>
    %c0_1 = arith.constant 0 : index
    %c0_2 = arith.constant 0 : index
    %1 = vector.load %arg2[%c0_1, %c0_2] : memref<32x32xf32, #tpu.memory_space<vmem>>, vector<32x32xf32>
    %cst = arith.constant dense<0.000000e+00> : vector<32x32xf32>
    %2 = tpu.matmul %0, %1, %cst {dimension_numbers = #tpu.dot_dimension_numbers<[1], [0], [0], [1], [0, 0, 1, 1], [], []>} : vector<32x32xf32>, vector<32x32xf32>, vector<32x32xf32> -> vector<32x32xf32>
    %c0_3 = arith.constant 0 : index
    %c0_4 = arith.constant 0 : index
    %3 = vector.load %arg3[%c0_3, %c0_4] : memref<1x32xf32, #tpu.memory_space<vmem>>, vector<1x32xf32>
    %4 = vector.broadcast %3 : vector<1x32xf32> to vector<32x32xf32>
    %5 = arith.addf %2, %4 : vector<32x32xf32>
    %6 = arith.negf %5 : vector<32x32xf32>
    %7 = math.exp %6 : vector<32x32xf32>
    %cst_5 = arith.constant 1.000000e+00 : f32
    %8 = vector.broadcast %cst_5 : f32 to vector<32x32xf32>
    %9 = arith.addf %8, %7 : vector<32x32xf32>
    %10 = arith.divf %8, %9 : vector<32x32xf32>
    %cst_6 = arith.constant 0.949999988 : f32
    %11 = vector.broadcast %cst_6 : f32 to vector<32x32xf32>
    %12 = arith.mulf %11, %10 : vector<32x32xf32>
    %cst_7 = arith.constant 5.000000e-02 : f32
    %13 = vector.broadcast %cst_7 : f32 to vector<32x32xf32>
    %14 = arith.addf %12, %13 : vector<32x32xf32>
    %c0_8 = arith.constant 0 : index
    %c0_9 = arith.constant 0 : index
    %15 = vector.load %arg4[%c0_8, %c0_9] : memref<32x32xf32, #tpu.memory_space<vmem>>, vector<32x32xf32>
    %16 = arith.cmpf olt, %15, %14 : vector<32x32xf32>
    %17 = arith.extui %16 : vector<32x32xi1> to vector<32x32xi32>
    %18 = arith.sitofp %17 : vector<32x32xi32> to vector<32x32xf32>
    %19 = math.log %14 : vector<32x32xf32>
    %cst_10 = arith.constant 1.000000e+00 : f32
    %20 = vector.broadcast %cst_10 : f32 to vector<32x32xf32>
    %21 = arith.subf %20, %14 : vector<32x32xf32>
    %cst_11 = arith.constant 9.99999996E-13 : f32
    %22 = vector.broadcast %cst_11 : f32 to vector<32x32xf32>
    %23 = arith.maximumf %21, %22 : vector<32x32xf32>
    %24 = math.log %23 : vector<32x32xf32>
    %25 = arith.select %16, %19, %24 : vector<32x32xi1>, vector<32x32xf32>
    %cst_12 = arith.constant 0.000000e+00 : f32
    %26 = vector.broadcast %cst_12 : f32 to vector<32x32xf32>
    %27 = arith.subf %26, %19 : vector<32x32xf32>
    %28 = tpu.concatenate %18, %25, %27, %14 in 1 : vector<32x32xf32>, vector<32x32xf32>, vector<32x32xf32>, vector<32x32xf32> -> vector<32x128xf32>
    %c0_13 = arith.constant 0 : index
    %c0_14 = arith.constant 0 : index
    %29 = vector.load %arg5[%c0_13, %c0_14] : memref<32x128xf32, #tpu.memory_space<vmem>>, vector<32x128xf32>
    tpu.vector_store %arg5[%c0_13, %c0_14], %28 {strides = array<i32>} : memref<32x128xf32, #tpu.memory_space<vmem>>, vector<32x128xf32>,
    return
  }
  func.func @transform_0(%arg0: i32) -> (i32, i32) {
    %c0_i32 = arith.constant 0 : i32
    %c0_i32_0 = arith.constant 0 : i32
    return %arg0, %c0_i32 : i32, i32
  }
  func.func @transform_1(%arg0: i32) -> (i32, i32) {
    %c0_i32 = arith.constant 0 : i32
    %c0_i32_0 = arith.constant 0 : i32
    %c0_i32_1 = arith.constant 0 : i32
    return %c0_i32, %c0_i32_0 : i32, i32
  }
  func.func @transform_2(%arg0: i32) -> (i32, i32) {
    %c0_i32 = arith.constant 0 : i32
    %c0_i32_0 = arith.constant 0 : i32
    %c0_i32_1 = arith.constant 0 : i32
    return %c0_i32, %c0_i32_0 : i32, i32
  }
  func.func @transform_3(%arg0: i32) -> (i32, i32) {
    %c0_i32 = arith.constant 0 : i32
    %c0_i32_0 = arith.constant 0 : i32
    return %arg0, %c0_i32 : i32, i32
  }
  func.func @transform_4(%arg0: i32) -> (i32, i32) {
    %c0_i32 = arith.constant 0 : i32
    %c0_i32_0 = arith.constant 0 : i32
    return %arg0, %c0_i32 : i32, i32
  }
}

</mosaic_0001>

<bundles_post_ra>
// kernel: controller_forward.1
= control target key start
LH: loop header
LB: loop body
LE: loop exit
PB: predicated region body
PF: predicated region fallthrough
CT: control target
= control target key end

     0   :  { %s662_s15 = smov 0   ;;  %s782_s0 = inlined_call_operand.vmem [shape: f32[64,32], index: 0, kind: input, shape index: {}]   ;;  %s783_s1 = inlined_call_operand.vmem [shape: f32[32,32], index: 1, kind: input, shape index: {}]   ;;  %s784_s2 = inlined_call_operand.vmem [shape: f32[1,32], index: 2, kind: input, shape index: {}]   ;;  %s785_s3 = inlined_call_operand.vmem [shape: f32[64,32], index: 3, kind: input, shape index: {}]   ;;  %s786_s4 = inlined_call_operand.vmem [shape: f32[64,128], index: 4, kind: output, shape index: {}]  }
   0x1 LB: > { %s543_s16 = sadd.s32 4294967295, %s631_s15   ;;  %p547_p0 = scmp.ge.s32.totalorder %s631_s15, 1  ;;  %s631_s15 = sphi %s662_s15, %s14_s15  }
   0x2   : > { %p174_p1 = scmp.lt.s32.totalorder %s631_s15, 3 }
   0x4   : > { %p175_p2 = pnand %p547_p0, %p174_p1 }
   0x5   : > { %s548_s21 = sshll.u32 (!%p175_p2), %s543_s16, 2  ;;  %s633_s6 = smov (!%p175_p2), 96  }
   0x6   : > { %178 = sbr.rel (%p175_p2) target bundleno = 336 (0x150), region = 36  ;;  %p206_p3 = scmp.lt.s32.totalorder (!%p175_p2), %s548_s21, 7 }
   0x7   : > { %s634_s10 = smov (!%p175_p2), 64   ;;  %s635_s11 = smov (!%p175_p2), 32  }
   0xb   : > { %v230_v0 = vld [vmem:[%s783_s1 + $0x18] sm:$0xff]  ;;  %v229_v1 = vld [vmem:[%s783_s1 + $0x10] sm:$0xff]  ;;  %v228_v2 = vld [vmem:[%s783_s1 + $0x8] sm:$0xff]  ;;  %s788_s21 = smov (!%p206_p3, %s548_s21), 7  ;;  %vm235_vm0 = vcmask 261120  }
   0xc   : > { %260 = vmatpush.msra.mxu0 %v230_v0  ;;  %568 = vmatpush.msra.mxu1 %v230_v0  ;;  %v227_v3 = vld [vmem:[%s783_s1] sm:$0xff]  ;;  %s682_s26 = sshll.u32 %s788_s21, 3 }
   0xd   : > { %569 = vmatpush.msra.mxu2 %v230_v0  ;;  %570 = vmatpush.msra.mxu3 %v230_v0  ;;  %s209_s29 = scalar_lea.vmem %s782_s0, %s682_s26  ;;  %v592_v8 = vld [vmem:[%s784_s2] ss:$0 sm:$0xff]  ;;  %s721_s9 = scalar_lea.vmem %s785_s3, %s682_s26 }
   0xe   : > { %261 = vmatpush.msra.mxu0 %v229_v1  ;;  %571 = vmatpush.msra.mxu1 %v229_v1  ;;  %v223_v4 = vld [vmem:[%s209_s29] sm:$0xff]  ;;  %v224_v5 = vld [vmem:[%s209_s29 + $0x8] sm:$0xff]  ;;  %v225_v6 = vld [vmem:[%s209_s29 + $0x10] sm:$0xff]  ;;  %s221_s14 = scalar_lea.vmem %s786_s4, %s682_s26 }
   0xf   : > { %572 = vmatpush.msra.mxu2 %v229_v1  ;;  %573 = vmatpush.msra.mxu3 %v229_v1  ;;  %v226_v7 = vld [vmem:[%s209_s29 + $0x18] sm:$0xff] }
  0x10   : > { %262 = vmatpush.msra.mxu0 %v228_v2  ;;  %574 = vmatpush.msra.mxu1 %v228_v2 }
  0x11   : > { %575 = vmatpush.msra.mxu2 %v228_v2  ;;  %576 = vmatpush.msra.mxu3 %v228_v2 }
  0x12   : > { %263 = vmatpush.msra.mxu0 %v227_v3  ;;  %577 = vmatpush.msra.mxu1 %v227_v3 }
  0x13   : > { %578 = vmatpush.msra.mxu2 %v227_v3  ;;  %579 = vmatpush.msra.mxu3 %v227_v3 }
  0x14   : > { %554 = vmatmul.msk.f32.vlgmr.msra.gmra.mxu0 %vm235_vm0, %v223_v4  ;;  %555 = vmatmul.msk.f32.vlgmr.msra.gmra.mxu1 %vm235_vm0, %v224_v5 }
  0x15   : > { %556 = vmatmul.msk.f32.vlgmr.msra.gmra.mxu2 %vm235_vm0, %v225_v6  ;;  %557 = vmatmul.msk.f32.vlgmr.msra.gmra.mxu3 %vm235_vm0, %v226_v7 }
  0x91   : > { %v265_v9 = vpop.f32.mrf.mxu0  ;;  %v268_v10 = vpop.f32.mrf.mxu1 }
  0x92   : > { %v266_v11 = vadd.f32 %v592_v8, %v265_v9  ;;  %v269_v12 = vadd.f32 %v592_v8, %v268_v10 }
  0x94   : > { %v558_v13 = vmul.f32 -1.442695, %v266_v11  ;;  %v559_v14 = vmul.f32 -1.442695, %v269_v12 }
  0x96   : > { %593 = vpow2.f32 %v558_v13 }
  0x97   : > { %595 = vpow2.f32 %v559_v14 }
  0x98   : > { %v271_v15 = vpop.f32.mrf.mxu2  ;;  %v274_v16 = vpop.f32.mrf.mxu3 }
  0x99   : > { %v272_v17 = vadd.f32 %v592_v8, %v271_v15  ;;  %v275_v18 = vadd.f32 %v592_v8, %v274_v16 }
  0x9b   : > { %v560_v19 = vmul.f32 -1.442695, %v272_v17  ;;  %v561_v20 = vmul.f32 -1.442695, %v275_v18 }
  0x9c   : > { %v594_v21 = vpop.eup %593 }
  0x9d   : > { %v596_v22 = vpop.eup %595  ;;  %v289_v23 = vadd.f32 1.0, %v594_v21  ;;  %597 = vpow2.f32 %v560_v19 }
  0x9e   : > { %v290_v24 = vadd.f32 1.0, %v596_v22  ;;  %599 = vpow2.f32 %v561_v20 }
  0x9f   : > { %601 = vrcp.f32 %v289_v23  ;;  %v302_v34 = vand.u32 2147483647, %v289_v23  ;;  %v304_v36 = vand.u32 2147483648, %v289_v23  ;;  %vm298_vm4 = vweird.f32 %v289_v23 }
  0xa0   : > { %603 = vrcp.f32 %v290_v24  ;;  %v317_v37 = vand.u32 2147483647, %v290_v24  ;;  %v319_v39 = vand.u32 2147483648, %v290_v24  ;;  %vm313_vm2 = vweird.f32 %v290_v24 }
  0xa1   : > { %vm303_vm5 = vcmp.eq.f32.partialorder %v302_v34, 8.507059e+37  ;;  %v305_v45 = vor.u32 1.1754944e-38, %v304_v36 }
  0xa2   : > { %vm318_vm7 = vcmp.eq.f32.partialorder %v317_v37, 8.507059e+37  ;;  %v320_v50 = vor.u32 1.1754944e-38, %v319_v39 }
  0xa3   : > { %v598_v25 = vpop.eup %597 }
  0xa4   : > { %v600_v26 = vpop.eup %599  ;;  %v291_v27 = vadd.f32 1.0, %v598_v25 }
  0xa5   : > { %v602_v28 = vpop.eup %601  ;;  %v695_v29 = vadd.f32 1.0, %v600_v26 }
  0xa6   : > { %v604_v30 = vpop.eup %603  ;;  %v294_v31 = vmul.f32 %v602_v28, %v289_v23  ;;  %605 = vrcp.f32 %v291_v27  ;;  %vm299_vm1 = vweird.f32 %v602_v28  ;;  %v332_v47 = vand.u32 2147483647, %v291_v27  ;;  %v361_v23 = vld [vmem:[%s721_s9] sm:$0xff] }
  0xa7   : > { %v309_v32 = vmul.f32 %v604_v30, %v290_v24  ;;  %607 = vrcp.f32 %v695_v29  ;;  %vm314_vm3 = vweird.f32 %v604_v30  ;;  %vm300_vm6 = vmor %vm298_vm4, %vm299_vm1  ;;  %v334_v52 = vand.u32 2147483648, %v291_v27 }
  0xa8   : > { %v295_v33 = vsub.f32 1.0, %v294_v31  ;;  %vm315_vm8 = vmor %vm313_vm2, %vm314_vm3  ;;  %v347_v58 = vand.u32 2147483647, %v695_v29  ;;  %v349_v61 = vand.u32 2147483648, %v695_v29  ;;  %vm343_vm10 = vweird.f32 %v695_v29 }
  0xa9   : > { %v310_v35 = vsub.f32 1.0, %v309_v32  ;;  %vm328_vm12 = vweird.f32 %v291_v27  ;;  %vm333_vm13 = vcmp.eq.f32.partialorder %v332_v47, 8.507059e+37  ;;  %v335_v2 = vor.u32 1.1754944e-38, %v334_v52 }
  0xaa   : > { %v296_v38 = vmul.f32 %v602_v28, %v295_v33  ;;  %vm348_vm1 = vcmp.eq.f32.partialorder %v347_v58, 8.507059e+37  ;;  %v350_v6 = vor.u32 1.1754944e-38, %v349_v61  ;;  %v636_v52 = vmov 0.0  }
  0xab   : > { %v311_v40 = vmul.f32 %v604_v30, %v310_v35  ;;  %v362_v35 = vld [vmem:[%s721_s9 + $0x8] sm:$0xff] }
  0xac   : > { %v606_v41 = vpop.eup %605  ;;  %v297_v42 = vadd.f32 %v602_v28, %v296_v38 }
  0xad   : > { %v608_v43 = vpop.eup %607  ;;  %v324_v44 = vmul.f32 %v606_v41, %v291_v27  ;;  %v312_v46 = vadd.f32 %v604_v30, %v311_v40  ;;  %vm329_vm9 = vweird.f32 %v606_v41  ;;  %v363_v40 = vld [vmem:[%s721_s9 + $0x10] sm:$0xff] }
  0xae   : > { %v339_v48 = vmul.f32 %v608_v43, %v695_v29  ;;  %v301_v49 = vsel %vm300_vm6, %v602_v28, %v297_v42  ;;  %vm344_vm11 = vweird.f32 %v608_v43  ;;  %vm330_vm14 = vmor %vm328_vm12, %vm329_vm9  ;;  %vm461_vm6 = vcmask 523264  }
  0xaf   : > { %v325_v51 = vsub.f32 1.0, %v324_v44  ;;  %v306_v53 = vsel %vm303_vm5, %v305_v45, %v301_v49  ;;  %v316_v54 = vsel %vm315_vm8, %v604_v30, %v312_v46  ;;  %vm345_vm15 = vmor %vm343_vm10, %vm344_vm11 }
  0xb0   : > { %v340_v55 = vsub.f32 1.0, %v339_v48  ;;  %v353_v56 = vmul.f32 0.95, %v306_v53  ;;  %v321_v57 = vsel %vm318_vm7, %v320_v50, %v316_v54  ;;  %vm466_vm7 = vcmask 785408  }
  0xb1   : > { %v326_v59 = vmul.f32 %v606_v41, %v325_v51  ;;  %v354_v60 = vmul.f32 0.95, %v321_v57 }
  0xb2   : > { %v702_v62 = vadd.f32 0.05, %v353_v56  ;;  %v341_v63 = vmul.f32 %v608_v43, %v340_v55 }
  0xb3   : > { %v327_v0 = vadd.f32 %v606_v41, %v326_v59  ;;  %v705_v1 = vadd.f32 0.05, %v354_v60 }
  0xb4   : > { %445 = vrot.lane.b32.xlu2 %v702_v62, %s633_s6  ;;  %609 = vlog2.f32 %v702_v62  ;;  %v385_v3 = vsub.f32 1.0, %v702_v62  ;;  %v342_v4 = vadd.f32 %v608_v43, %v341_v63  ;;  %vm365_vm2 = vcmp.lt.f32.partialorder %v361_v23, %v702_v62 }
  0xb5   : > { %611 = vlog2.f32 %v705_v1  ;;  %v331_v5 = vsel %vm330_vm14, %v606_v41, %v327_v0  ;;  %v386_v9 = vsub.f32 1.0, %v705_v1  ;;  %vm366_vm3 = vcmp.lt.f32.partialorder %v362_v35, %v705_v1 }
  0xb6   : > { %v389_v7 = vmax.f32 %v385_v3, 1e-12  ;;  %v336_v8 = vsel %vm333_vm13, %v335_v2, %v331_v5  ;;  %v346_v10 = vsel %vm345_vm15, %v608_v43, %v342_v4  ;;  %v364_v43 = vld [vmem:[%s721_s9 + $0x18] sm:$0xff]  ;;  %v562_v53 = vsel %vm365_vm2, 1.0, %v636_v52 }
  0xb7   : > { %v355_v11 = vmul.f32 0.95, %v336_v8  ;;  %v351_v12 = vsel %vm348_vm1, %v350_v6, %v346_v10  ;;  %v390_v13 = vmax.f32 %v386_v9, 1e-12  ;;  %v563_v59 = vsel %vm366_vm3, 1.0, %v636_v52 }
  0xb8   : > { %613 = vlog2.f32 %v389_v7  ;;  %v356_v14 = vmul.f32 0.95, %v351_v12 }
  0xb9   : > { %v715_v15 = vadd.f32 0.05, %v355_v11 }
  0xba   : > { %v610_v16 = vpop.eup %609  ;;  %v723_v17 = vadd.f32 0.05, %v356_v14 }
  0xbb   : > { %v612_v18 = vpop.eup %611  ;;  %v378_v19 = vmul.f32 0.6931472, %v610_v16  ;;  %615 = vlog2.f32 %v715_v15  ;;  %v387_v20 = vsub.f32 1.0, %v715_v15  ;;  %vm367_vm4 = vcmp.lt.f32.partialorder %v363_v40, %v715_v15 }
  0xbc   : > { %447 = vrot.lane.b32.xlu2 %v705_v1, %s633_s6  ;;  %617 = vlog2.f32 %v390_v13  ;;  %v388_v21 = vsub.f32 1.0, %v723_v17  ;;  %v380_v26 = vmul.f32 0.6931472, %v612_v18  ;;  %vm368_vm5 = vcmp.lt.f32.partialorder %v364_v43, %v723_v17 }
  0xbd   : > { %v405_v22 = vsub.f32 0.0, %v378_v19  ;;  %v391_v24 = vmax.f32 %v387_v20, 1e-12  ;;  %v564_v4 = vsel %vm367_vm4, 1.0, %v636_v52  ;;  %v565_v8 = vsel %vm368_vm5, 1.0, %v636_v52 }
  0xbe   : > { %v614_v25 = vpop.eup %613  ;;  %v392_v28 = vmax.f32 %v388_v21, 1e-12  ;;  %v406_v32 = vsub.f32 0.0, %v380_v26 }
  0xbf   : > { %429 = vrot.lane.b32.xlu1 %v405_v22, %s634_s10  ;;  %v394_v27 = vmul.f32 0.6931472, %v614_v25  ;;  %619 = vlog2.f32 %v391_v24 }
  0xc0   : > { %621 = vlog2.f32 %v392_v28 }
  0xc1   : > { %v616_v29 = vpop.eup %615  ;;  %v401_v30 = vsel %vm365_vm2, %v378_v19, %v394_v27  ;;  %623 = vlog2.f32 %v723_v17 }
  0xc2   : > { %v618_v31 = vpop.eup %617  ;;  %413 = vrot.lane.b32.xlu0 %v401_v30, %s635_s11  ;;  %v382_v33 = vmul.f32 0.6931472, %v616_v29 }
  0xc3   : > { %v396_v36 = vmul.f32 0.6931472, %v618_v31 }
  0xc4   : > { %431 = vrot.lane.b32.xlu2 %v406_v32, %s634_s10  ;;  %v407_v34 = vsub.f32 0.0, %v382_v33 }
  0xc5   : > { %v620_v37 = vpop.eup %619  ;;  %v402_v38 = vsel %vm366_vm3, %v380_v26, %v396_v36 }
  0xc6   : > { %v622_v39 = vpop.eup %621  ;;  %v398_v41 = vmul.f32 0.6931472, %v620_v37 }
  0xc7   : > { %433 = vrot.lane.b32.xlu1 %v407_v34, %s634_s10  ;;  %v624_v42 = vpop.eup %623  ;;  %v400_v44 = vmul.f32 0.6931472, %v622_v39 }
  0xc8   : > { %v403_v45 = vsel %vm367_vm4, %v382_v33, %v398_v41  ;;  %v384_v46 = vmul.f32 0.6931472, %v624_v42 }
  0xca   : > { %415 = vrot.lane.b32.xlu0 %v402_v38, %s635_s11  ;;  %v404_v47 = vsel %vm368_vm5, %v384_v46, %v400_v44  ;;  %v408_v48 = vsub.f32 0.0, %v384_v46 }
  0xcc   : > { %451 = vrot.lane.b32.xlu2 %v723_v17, %s633_s6 }
  0xcf   : > { %417 = vrot.lane.b32.xlu1 %v403_v45, %s635_s11 }
  0xd2   : > { %419 = vrot.lane.b32.xlu0 %v404_v47, %s635_s11 }
  0xd7   : > { %449 = vrot.lane.b32.xlu1 %v715_v15, %s633_s6 }
  0xda   : > { %435 = vrot.lane.b32.xlu0 %v408_v48, %s634_s10 }
 0x10e   : > { %v446_v49 = vpop.permute.xlu2 %445 }
 0x116   : > { %v448_v51 = vpop.permute.xlu2 %447 }
 0x11e   : > { %v432_v61 = vpop.permute.xlu2 %431 }
 0x126   : > { %v452_v11 = vpop.permute.xlu2 %451 }
 0x131   : > { %v430_v50 = vpop.permute.xlu1 %429 }
 0x134   : > { %v414_v54 = vpop.permute.xlu0 %413 }
 0x135   : > { %v457_v55 = vsel %vm235_vm0, %v562_v53, %v414_v54 }
 0x136   : > { %v462_v56 = vsel %vm461_vm6, %v457_v55, %v430_v50 }
 0x137   : > { %v467_v57 = vsel %vm466_vm7, %v462_v56, %v446_v49 }
 0x138   : > { %471 = vst [vmem:[%s221_s14] sm:$0xff] %v467_v57 }
 0x139   : > { %v434_v58 = vpop.permute.xlu1 %433 }
 0x13c   : > { %v416_v60 = vpop.permute.xlu0 %415 }
 0x13d   : > { %v458_v62 = vsel %vm235_vm0, %v563_v59, %v416_v60 }
 0x13e   : > { %v463_v63 = vsel %vm461_vm6, %v458_v62, %v432_v61 }
 0x13f   : > { %v468_v0 = vsel %vm466_vm7, %v463_v63, %v448_v51 }
 0x140   : > { %472 = vst [vmem:[%s221_s14 + $0x8] sm:$0xff] %v468_v0 }
 0x141   : > { %v418_v2 = vpop.permute.xlu1 %417 }
 0x142   : > { %v459_v5 = vsel %vm235_vm0, %v564_v4, %v418_v2 }
 0x143   : > { %v464_v6 = vsel %vm461_vm6, %v459_v5, %v434_v58 }
 0x144   : > { %v420_v3 = vpop.permute.xlu0 %419 }
 0x145   : > { %v460_v9 = vsel %vm235_vm0, %v565_v8, %v420_v3 }
 0x149   : > { %v450_v1 = vpop.permute.xlu1 %449 }
 0x14a   : > { %v469_v7 = vsel %vm466_vm7, %v464_v6, %v450_v1 }
 0x14b   : > { %473 = vst [vmem:[%s221_s14 + $0x10] sm:$0xff] %v469_v7 }
 0x14c   : > { %v436_v10 = vpop.permute.xlu0 %435 }
 0x14d   : > { %v465_v12 = vsel %vm461_vm6, %v460_v9, %v436_v10 }
 0x14e   : > { %v470_v13 = vsel %vm466_vm7, %v465_v12, %v452_v11 }
 0x14f   : > { %474 = vst [vmem:[%s221_s14 + $0x18] sm:$0xff] %v470_v13 }
 0x150 PF: > { %s14_s15 = sadd.s32 1, %s631_s15  }
 0x151   : > { %p11_p4 = scmp.ge.s32.totalorder %s14_s15, 4  }
 0x153   :  { %13 = sbr.rel (!%p11_p4) target bundleno = 1 (0x1), region = 69 }

</bundles_post_ra>
